<compile_context>
chip_gen: v7x
topology: tpu7x:2x2x1
jax: 0.10.0
libtpu: 0.0.40
codegen_flags: <defaults>
</compile_context>

<pallas_src>
import jax
import jax.numpy as jnp
from jax.experimental import pallas as pl
from jax.experimental.pallas import tpu as pltpu

EPS = 1e-5


def _make_kernel(B, H, W, Cin, Co):
    BH = B * H
    lanes = W * Co
    inv_n = 1.0 / float(B * H * W)

    def kernel(x_ref, m1_ref, m2_ref, ms_ref, gb_ref, out_ref):
        x = x_ref[...]                       # (BH, W*Cin)  f32, lane-folded input
        gb = gb_ref[...]                     # (4, W*Co)    f32: g1, b1, g2, b2+bs

        # row-within-image index; masks kill the cyclic wrap of the rolls at
        # image (and batch) boundaries -> exact 'SAME' padding semantics.
        row = jax.lax.broadcasted_iota(jnp.int32, (BH, 1), 0)
        rin = row % H
        up_ok = rin > 0
        dn_ok = rin < (H - 1)

        def conv3(v, m_ref):
            # H-halo via sublane rolls (jnp.roll semantics): row r reads r-1 / r+1.
            up = jnp.where(up_ok, pltpu.roll(v, 1, axis=0), 0.0)
            dn = jnp.where(dn_ok, pltpu.roll(v, BH - 1, axis=0), 0.0)
            acc = jnp.dot(up.astype(jnp.bfloat16), m_ref[0],
                          preferred_element_type=jnp.float32)
            acc = acc + jnp.dot(v.astype(jnp.bfloat16), m_ref[1],
                                preferred_element_type=jnp.float32)
            acc = acc + jnp.dot(dn.astype(jnp.bfloat16), m_ref[2],
                                preferred_element_type=jnp.float32)
            return acc                        # (BH, W*Co) f32

        def channel_mean(row_sum):
            # (1, W*Co) row-sum -> per-channel mean replicated on all its lanes
            # via a log2(W) cyclic lane-roll tree (W must be a power of two).
            s = row_sum
            shift = Co
            while shift < lanes:
                s = s + pltpu.roll(s, shift, axis=1)
                shift *= 2
            return s * inv_n

        def bn(acc, g, b, relu):
            m = channel_mean(jnp.sum(acc, axis=0, keepdims=True))
            d = acc - m
            var = channel_mean(jnp.sum(d * d, axis=0, keepdims=True))  # centered
            y = d * jax.lax.rsqrt(var + EPS) * g + b
            return jnp.maximum(y, 0.0) if relu else y

        acc1 = conv3(x, m1_ref)                                   # conv1
        h1 = bn(acc1, gb[0:1], gb[1:2], relu=True)                # bn1 + relu
        acc2 = conv3(h1, m2_ref)                                  # conv2
        h2 = bn(acc2, gb[2:3], gb[3:4], relu=False)               # bn2 (+bs folded)

        # shortcut: 1x1 conv = block-diagonal matmul (bias already in gb[3])
        sc = jnp.dot(x.astype(jnp.bfloat16), ms_ref[...],
                     preferred_element_type=jnp.float32)

        # residual add + relu; (BH, W*Co) = (32, 128) -> lane-dense unmasked store
        out_ref[...] = jnp.maximum(h2 + sc, 0.0)

    return kernel


def _banded_conv_weights(w_hwio, W):
    """(3,3,Ci,Co) HWIO kernel -> (3, W*Ci, W*Co) per-kh banded matrices for the
    lane-folded layout.  Slice kh, row j*Ci+ci, column j2*Co+co carries
    w[kh, j-j2+1, ci, co] inside the |j-j2|<=1 band; zeros outside the band
    encode the W-direction halo (no padding needed)."""
    _, _, Ci, Co = w_hwio.shape
    j = jnp.arange(W)
    d = j[:, None] - j[None, :] + 1                               # kw index
    band = ((d >= 0) & (d <= 2)).astype(w_hwio.dtype)
    blocks = w_hwio[:, jnp.clip(d, 0, 2)] * band[None, :, :, None, None]  # (3,W,W,Ci,Co)
    return blocks.transpose(0, 1, 3, 2, 4).reshape(3, W * Ci, W * Co)


def prepare_constants(params, W):
    """Build all kernel constants ONCE per weight update (hoisted out of the
    per-forward path)."""
    w1, g1, b1, w2, g2, b2, ws, bs = params
    Cin, Co = ws.shape

    M1 = _banded_conv_weights(w1, W).astype(jnp.bfloat16)         # (3, W*Cin, W*Co)
    M2 = _banded_conv_weights(w2, W).astype(jnp.bfloat16)         # (3, W*Co,  W*Co)
    Ms = (jnp.eye(W, dtype=jnp.float32)[:, None, :, None] *
          ws[None, :, None, :]).reshape(W * Cin, W * Co).astype(jnp.bfloat16)

    tile_c = lambda v: jnp.tile(v.reshape(1, Co).astype(jnp.float32), (1, W))
    # shortcut bias folded into bn2 beta: relu(bn2(..)+b2 + x*Ws + bs)
    gb = jnp.concatenate(
        [tile_c(g1), tile_c(b1), tile_c(g2), tile_c(b2 + bs)], axis=0)  # (4, W*Co)
    return (M1, M2, Ms, gb)


@jax.jit
def simple_residual_block(x_nchw, consts):
    """Forward pass of SimpleResidualBlock (stride=1). NCHW in, NCHW out."""
    M1, M2, Ms, gb = consts
    B, Cin, H, W = x_nchw.shape
    Co = gb.shape[1] // W
    BH = B * H
    assert (W & (W - 1)) == 0, "lane-roll channel reduction assumes power-of-two W"

    # lane-folded layout: rows = B*H (sublanes), lanes = W*C.  f32 so in-kernel
    # sublane rolls stay 32-bit; operands are cast to bf16 only at the MXU.
    x2d = jnp.transpose(x_nchw, (0, 2, 3, 1)).reshape(BH, W * Cin).astype(jnp.float32)

    out2d = pl.pallas_call(
        _make_kernel(B, H, W, Cin, Co),
        out_shape=jax.ShapeDtypeStruct((BH, W * Co), jnp.float32),
        in_specs=[pl.BlockSpec(memory_space=pltpu.MemorySpace.VMEM)] * 5,
        out_specs=pl.BlockSpec(memory_space=pltpu.MemorySpace.VMEM),
    )(x2d, M1, M2, Ms, gb)

    return jnp.transpose(out2d.reshape(B, H, W, Co), (0, 3, 1, 2))


def _reference_forward(x_nchw, params):
    """Pure-JAX f32 reference (lax.conv), NCHW in, NCHW out."""
    w1, g1, b1, w2, g2, b2, ws, bs = params
    x = jnp.transpose(x_nchw, (0, 2, 3, 1)).astype(jnp.float32)

    def conv3(x, w):
        return jax.lax.conv_general_dilated(
            x, w, (1, 1), 'SAME', dimension_numbers=('NHWC', 'HWIO', 'NHWC'))

    def bn(x, g, b):
        m = jnp.mean(x, axis=(0, 1, 2), keepdims=True)
        v = jnp.mean((x - m) ** 2, axis=(0, 1, 2), keepdims=True)
        return (x - m) * jax.lax.rsqrt(v + EPS) * g + b

    h = jax.nn.relu(bn(conv3(x, w1), g1, b1))
    h = bn(conv3(h, w2), g2, b2)
    sc = jnp.einsum('bhwi,io->bhwo', x, ws) + bs
    out = jax.nn.relu(h + sc)
    return jnp.transpose(out, (0, 3, 1, 2))


def make_params(key, cin, cout):
    ks = jax.random.split(key, 6)
    w1 = 0.1 * jax.random.normal(ks[0], (3, 3, cin, cout), jnp.float32)   # conv1 (HWIO)
    w2 = 0.1 * jax.random.normal(ks[1], (3, 3, cout, cout), jnp.float32)  # conv2 (HWIO)
    g1 = 1.0 + 0.1 * jax.random.normal(ks[2], (1, cout), jnp.float32)     # bn1 weight
    b1 = 0.1 * jax.random.normal(ks[3], (1, cout), jnp.float32)           # bn1 bias
    g2 = 1.0 + 0.1 * jax.random.normal(ks[4], (1, cout), jnp.float32)     # bn2 weight
    b2 = 0.1 * jax.random.normal(ks[5], (1, cout), jnp.float32)           # bn2 bias
    ws = 0.1 * jax.random.normal(jax.random.fold_in(key, 7), (cin, cout), jnp.float32)  # shortcut 1x1 (IO)
    bs = 0.1 * jax.random.normal(jax.random.fold_in(key, 8), (1, cout), jnp.float32)    # shortcut bias
    return (w1, g1, b1, w2, g2, b2, ws, bs)


# TODO(synk): training-mode BatchNorm running_mean/running_var buffer updates are
# not produced (output-only parity with the PyTorch forward).

if __name__ == "__main__":
    key = jax.random.PRNGKey(0)
    B, Cin, Cout, H, W = 2, 4, 8, 16, 16   # Cin != Cout -> 1x1-conv shortcut path

    x = jax.random.normal(jax.random.fold_in(key, 1), (B, Cin, H, W), jnp.float32)
    params = make_params(jax.random.fold_in(key, 2), Cin, Cout)

    consts = prepare_constants(params, W)           # hoisted: once per weight update
    out = simple_residual_block(x, consts)
    out = jax.block_until_ready(out)

    ref = _reference_forward(x, params)
    assert out.shape == (B, Cout, H, W)
    # bf16 MXU operands (f32 accumulation) vs. an all-f32 reference -> loose tolerance
    assert jnp.allclose(out, ref, rtol=5e-2, atol=5e-2), (
        f"max abs err {float(jnp.max(jnp.abs(out - ref)))}")

    print("KERNEL_OK")
</pallas_src>

<mosaic_0001>
module attributes {stable_mosaic.version = 11 : i64} {
  func.func @kernel(%arg0: memref<32x64xf32, #tpu.memory_space<vmem>>, %arg1: memref<3x64x128xbf16, #tpu.memory_space<vmem>>, %arg2: memref<3x128x128xbf16, #tpu.memory_space<vmem>>, %arg3: memref<64x128xbf16, #tpu.memory_space<vmem>>, %arg4: memref<4x128xf32, #tpu.memory_space<vmem>>, %arg5: memref<32x128xf32, #tpu.memory_space<vmem>>) attributes {dimension_semantics = [], scalar_prefetch = 0 : i64, scratch_operands = 0 : i64, tpu.core_type = #tpu.core_type<tc>} {
    %c0 = arith.constant 0 : index
    %c0_0 = arith.constant 0 : index
    %0 = vector.load %arg0[%c0, %c0_0] : memref<32x64xf32, #tpu.memory_space<vmem>>, vector<32x64xf32>
    %c0_1 = arith.constant 0 : index
    %c0_2 = arith.constant 0 : index
    %1 = vector.load %arg4[%c0_1, %c0_2] : memref<4x128xf32, #tpu.memory_space<vmem>>, vector<4x128xf32>
    %2 = tpu.iota {dimensions = array<i32: 0>} : vector<32x1xi32>
    %c16_i32 = arith.constant 16 : i32
    %c0_i32 = arith.constant 0 : i32
    %3 = arith.cmpi eq, %c16_i32, %c0_i32 : i32
    %c1_i32 = arith.constant 1 : i32
    %4 = arith.select %3, %c1_i32, %c16_i32 : i32
    %5 = vector.broadcast %4 : i32 to vector<32x1xi32>
    %6 = arith.remsi %2, %5 : vector<32x1xi32>
    %c0_i32_3 = arith.constant 0 : i32
    %7 = vector.broadcast %c0_i32_3 : i32 to vector<32x1xi32>
    %8 = arith.cmpi ne, %6, %7 : vector<32x1xi32>
    %c0_i32_4 = arith.constant 0 : i32
    %9 = vector.broadcast %c0_i32_4 : i32 to vector<32x1xi32>
    %10 = arith.cmpi slt, %6, %9 : vector<32x1xi32>
    %c0_i32_5 = arith.constant 0 : i32
    %11 = arith.cmpi slt, %4, %c0_i32_5 : i32
    %12 = vector.broadcast %11 : i1 to vector<32x1xi1>
    %13 = vector.broadcast %12 : vector<32x1xi1> to vector<32x1xi1>
    %14 = arith.xori %10, %13 : vector<32x1xi1>
    %15 = arith.andi %14, %8 : vector<32x1xi1>
    %16 = vector.broadcast %4 : i32 to vector<32x1xi32>
    %17 = arith.addi %6, %16 : vector<32x1xi32>
    %18 = arith.select %15, %17, %6 : vector<32x1xi1>, vector<32x1xi32>
    %c0_i32_6 = arith.constant 0 : i32
    %19 = vector.broadcast %c0_i32_6 : i32 to vector<32x1xi32>
    %20 = arith.cmpi sgt, %18, %19 : vector<32x1xi32>
    %c15_i32 = arith.constant 15 : i32
    %21 = vector.broadcast %c15_i32 : i32 to vector<32x1xi32>
    %22 = arith.cmpi slt, %18, %21 : vector<32x1xi32>
    %c1_i32_7 = arith.constant 1 : i32
    %23 = tpu.dynamic_rotate %0 by %c1_i32_7 dim 0 : vector<32x64xf32>, i32 -> vector<32x64xf32>
    %cst = arith.constant 0.000000e+00 : f32
    %24 = vector.shape_cast %20 : vector<32x1xi1> to vector<32x1xi1>
    %25 = vector.broadcast %24 : vector<32x1xi1> to vector<32x64xi1>
    %26 = vector.broadcast %cst : f32 to vector<32x64xf32>
    %27 = arith.select %25, %23, %26 : vector<32x64xi1>, vector<32x64xf32>
    %c31_i32 = arith.constant 31 : i32
    %28 = tpu.dynamic_rotate %0 by %c31_i32 dim 0 : vector<32x64xf32>, i32 -> vector<32x64xf32>
    %cst_8 = arith.constant 0.000000e+00 : f32
    %29 = vector.shape_cast %22 : vector<32x1xi1> to vector<32x1xi1>
    %30 = vector.broadcast %29 : vector<32x1xi1> to vector<32x64xi1>
    %31 = vector.broadcast %cst_8 : f32 to vector<32x64xf32>
    %32 = arith.select %30, %28, %31 : vector<32x64xi1>, vector<32x64xf32>
    %33 = arith.truncf %27 : vector<32x64xf32> to vector<32x64xbf16>
    %c0_9 = arith.constant 0 : index
    %c0_10 = arith.constant 0 : index
    %c0_11 = arith.constant 0 : index
    %34 = vector.load %arg1[%c0_9, %c0_10, %c0_11] : memref<3x64x128xbf16, #tpu.memory_space<vmem>>, vector<1x64x128xbf16>
    %35 = vector.shape_cast %34 : vector<1x64x128xbf16> to vector<64x128xbf16>
    %cst_12 = arith.constant dense<0.000000e+00> : vector<32x128xf32>
    %36 = tpu.matmul %33, %35, %cst_12 {dimension_numbers = #tpu.dot_dimension_numbers<[1], [0], [0], [1], [0, 0, 1, 1], [], []>} : vector<32x64xbf16>, vector<64x128xbf16>, vector<32x128xf32> -> vector<32x128xf32>
    %37 = arith.truncf %0 : vector<32x64xf32> to vector<32x64xbf16>
    %c1 = arith.constant 1 : index
    %c0_13 = arith.constant 0 : index
    %c0_14 = arith.constant 0 : index
    %38 = vector.load %arg1[%c1, %c0_13, %c0_14] : memref<3x64x128xbf16, #tpu.memory_space<vmem>>, vector<1x64x128xbf16>
    %39 = vector.shape_cast %38 : vector<1x64x128xbf16> to vector<64x128xbf16>
    %cst_15 = arith.constant dense<0.000000e+00> : vector<32x128xf32>
    %40 = tpu.matmul %37, %39, %cst_15 {dimension_numbers = #tpu.dot_dimension_numbers<[1], [0], [0], [1], [0, 0, 1, 1], [], []>} : vector<32x64xbf16>, vector<64x128xbf16>, vector<32x128xf32> -> vector<32x128xf32>
    %41 = arith.addf %36, %40 : vector<32x128xf32>
    %42 = arith.truncf %32 : vector<32x64xf32> to vector<32x64xbf16>
    %c2 = arith.constant 2 : index
    %c0_16 = arith.constant 0 : index
    %c0_17 = arith.constant 0 : index
    %43 = vector.load %arg1[%c2, %c0_16, %c0_17] : memref<3x64x128xbf16, #tpu.memory_space<vmem>>, vector<1x64x128xbf16>
    %44 = vector.shape_cast %43 : vector<1x64x128xbf16> to vector<64x128xbf16>
    %cst_18 = arith.constant dense<0.000000e+00> : vector<32x128xf32>
    %45 = tpu.matmul %42, %44, %cst_18 {dimension_numbers = #tpu.dot_dimension_numbers<[1], [0], [0], [1], [0, 0, 1, 1], [], []>} : vector<32x64xbf16>, vector<64x128xbf16>, vector<32x128xf32> -> vector<32x128xf32>
    %46 = arith.addf %41, %45 : vector<32x128xf32>
    %47 = vector.extract_strided_slice %1 {offsets = [0, 0], sizes = [1, 128], strides = [1, 1]} : vector<4x128xf32> to vector<1x128xf32>
    %48 = vector.extract_strided_slice %1 {offsets = [1, 0], sizes = [1, 128], strides = [1, 1]} : vector<4x128xf32> to vector<1x128xf32>
    %cst_19 = arith.constant dense<0.000000e+00> : vector<128xf32>
    %49 = vector.multi_reduction <add>, %46, %cst_19 [0] : vector<32x128xf32> to vector<128xf32>
    %50 = vector.shape_cast %49 : vector<128xf32> to vector<1x128xf32>
    %c8_i32 = arith.constant 8 : i32
    %51 = tpu.dynamic_rotate %50 by %c8_i32 dim 1 : vector<1x128xf32>, i32 -> vector<1x128xf32>
    %52 = arith.addf %50, %51 : vector<1x128xf32>
    %c16_i32_20 = arith.constant 16 : i32
    %53 = tpu.dynamic_rotate %52 by %c16_i32_20 dim 1 : vector<1x128xf32>, i32 -> vector<1x128xf32>
    %54 = arith.addf %52, %53 : vector<1x128xf32>
    %c32_i32 = arith.constant 32 : i32
    %55 = tpu.dynamic_rotate %54 by %c32_i32 dim 1 : vector<1x128xf32>, i32 -> vector<1x128xf32>
    %56 = arith.addf %54, %55 : vector<1x128xf32>
    %c64_i32 = arith.constant 64 : i32
    %57 = tpu.dynamic_rotate %56 by %c64_i32 dim 1 : vector<1x128xf32>, i32 -> vector<1x128xf32>
    %58 = arith.addf %56, %57 : vector<1x128xf32>
    %cst_21 = arith.constant 0.001953125 : f32
    %59 = vector.broadcast %cst_21 : f32 to vector<1x128xf32>
    %60 = arith.mulf %58, %59 : vector<1x128xf32>
    %61 = vector.broadcast %60 : vector<1x128xf32> to vector<32x128xf32>
    %62 = arith.subf %46, %61 : vector<32x128xf32>
    %63 = arith.mulf %62, %62 : vector<32x128xf32>
    %cst_22 = arith.constant dense<0.000000e+00> : vector<128xf32>
    %64 = vector.multi_reduction <add>, %63, %cst_22 [0] : vector<32x128xf32> to vector<128xf32>
    %65 = vector.shape_cast %64 : vector<128xf32> to vector<1x128xf32>
    %c8_i32_23 = arith.constant 8 : i32
    %66 = tpu.dynamic_rotate %65 by %c8_i32_23 dim 1 : vector<1x128xf32>, i32 -> vector<1x128xf32>
    %67 = arith.addf %65, %66 : vector<1x128xf32>
    %c16_i32_24 = arith.constant 16 : i32
    %68 = tpu.dynamic_rotate %67 by %c16_i32_24 dim 1 : vector<1x128xf32>, i32 -> vector<1x128xf32>
    %69 = arith.addf %67, %68 : vector<1x128xf32>
    %c32_i32_25 = arith.constant 32 : i32
    %70 = tpu.dynamic_rotate %69 by %c32_i32_25 dim 1 : vector<1x128xf32>, i32 -> vector<1x128xf32>
    %71 = arith.addf %69, %70 : vector<1x128xf32>
    %c64_i32_26 = arith.constant 64 : i32
    %72 = tpu.dynamic_rotate %71 by %c64_i32_26 dim 1 : vector<1x128xf32>, i32 -> vector<1x128xf32>
    %73 = arith.addf %71, %72 : vector<1x128xf32>
    %cst_27 = arith.constant 0.001953125 : f32
    %74 = vector.broadcast %cst_27 : f32 to vector<1x128xf32>
    %75 = arith.mulf %73, %74 : vector<1x128xf32>
    %cst_28 = arith.constant 9.99999974E-6 : f32
    %76 = vector.broadcast %cst_28 : f32 to vector<1x128xf32>
    %77 = arith.addf %75, %76 : vector<1x128xf32>
    %78 = math.rsqrt %77 : vector<1x128xf32>
    %79 = vector.broadcast %78 : vector<1x128xf32> to vector<32x128xf32>
    %80 = arith.mulf %62, %79 : vector<32x128xf32>
    %81 = vector.broadcast %47 : vector<1x128xf32> to vector<32x128xf32>
    %82 = arith.mulf %80, %81 : vector<32x128xf32>
    %83 = vector.broadcast %48 : vector<1x128xf32> to vector<32x128xf32>
    %84 = arith.addf %82, %83 : vector<32x128xf32>
    %cst_29 = arith.constant 0.000000e+00 : f32
    %85 = vector.broadcast %cst_29 : f32 to vector<32x128xf32>
    %86 = arith.maximumf %84, %85 : vector<32x128xf32>
    %c1_i32_30 = arith.constant 1 : i32
    %87 = tpu.dynamic_rotate %86 by %c1_i32_30 dim 0 : vector<32x128xf32>, i32 -> vector<32x128xf32>
    %cst_31 = arith.constant 0.000000e+00 : f32
    %88 = vector.shape_cast %20 : vector<32x1xi1> to vector<32x1xi1>
    %89 = vector.broadcast %88 : vector<32x1xi1> to vector<32x128xi1>
    %90 = vector.broadcast %cst_31 : f32 to vector<32x128xf32>
    %91 = arith.select %89, %87, %90 : vector<32x128xi1>, vector<32x128xf32>
    %c31_i32_32 = arith.constant 31 : i32
    %92 = tpu.dynamic_rotate %86 by %c31_i32_32 dim 0 : vector<32x128xf32>, i32 -> vector<32x128xf32>
    %cst_33 = arith.constant 0.000000e+00 : f32
    %93 = vector.shape_cast %22 : vector<32x1xi1> to vector<32x1xi1>
    %94 = vector.broadcast %93 : vector<32x1xi1> to vector<32x128xi1>
    %95 = vector.broadcast %cst_33 : f32 to vector<32x128xf32>
    %96 = arith.select %94, %92, %95 : vector<32x128xi1>, vector<32x128xf32>
    %97 = arith.truncf %91 : vector<32x128xf32> to vector<32x128xbf16>
    %c0_34 = arith.constant 0 : index
    %c0_35 = arith.constant 0 : index
    %c0_36 = arith.constant 0 : index
    %98 = vector.load %arg2[%c0_34, %c0_35, %c0_36] : memref<3x128x128xbf16, #tpu.memory_space<vmem>>, vector<1x128x128xbf16>
    %99 = vector.shape_cast %98 : vector<1x128x128xbf16> to vector<128x128xbf16>
    %cst_37 = arith.constant dense<0.000000e+00> : vector<32x128xf32>
    %100 = tpu.matmul %97, %99, %cst_37 {dimension_numbers = #tpu.dot_dimension_numbers<[1], [0], [0], [1], [0, 0, 1, 1], [], []>} : vector<32x128xbf16>, vector<128x128xbf16>, vector<32x128xf32> -> vector<32x128xf32>
    %101 = arith.truncf %86 : vector<32x128xf32> to vector<32x128xbf16>
    %c1_38 = arith.constant 1 : index
    %c0_39 = arith.constant 0 : index
    %c0_40 = arith.constant 0 : index
    %102 = vector.load %arg2[%c1_38, %c0_39, %c0_40] : memref<3x128x128xbf16, #tpu.memory_space<vmem>>, vector<1x128x128xbf16>
    %103 = vector.shape_cast %102 : vector<1x128x128xbf16> to vector<128x128xbf16>
    %cst_41 = arith.constant dense<0.000000e+00> : vector<32x128xf32>
    %104 = tpu.matmul %101, %103, %cst_41 {dimension_numbers = #tpu.dot_dimension_numbers<[1], [0], [0], [1], [0, 0, 1, 1], [], []>} : vector<32x128xbf16>, vector<128x128xbf16>, vector<32x128xf32> -> vector<32x128xf32>
    %105 = arith.addf %100, %104 : vector<32x128xf32>
    %106 = arith.truncf %96 : vector<32x128xf32> to vector<32x128xbf16>
    %c2_42 = arith.constant 2 : index
    %c0_43 = arith.constant 0 : index
    %c0_44 = arith.constant 0 : index
    %107 = vector.load %arg2[%c2_42, %c0_43, %c0_44] : memref<3x128x128xbf16, #tpu.memory_space<vmem>>, vector<1x128x128xbf16>
    %108 = vector.shape_cast %107 : vector<1x128x128xbf16> to vector<128x128xbf16>
    %cst_45 = arith.constant dense<0.000000e+00> : vector<32x128xf32>
    %109 = tpu.matmul %106, %108, %cst_45 {dimension_numbers = #tpu.dot_dimension_numbers<[1], [0], [0], [1], [0, 0, 1, 1], [], []>} : vector<32x128xbf16>, vector<128x128xbf16>, vector<32x128xf32> -> vector<32x128xf32>
    %110 = arith.addf %105, %109 : vector<32x128xf32>
    %111 = vector.extract_strided_slice %1 {offsets = [2, 0], sizes = [1, 128], strides = [1, 1]} : vector<4x128xf32> to vector<1x128xf32>
    %112 = vector.extract_strided_slice %1 {offsets = [3, 0], sizes = [1, 128], strides = [1, 1]} : vector<4x128xf32> to vector<1x128xf32>
    %cst_46 = arith.constant dense<0.000000e+00> : vector<128xf32>
    %113 = vector.multi_reduction <add>, %110, %cst_46 [0] : vector<32x128xf32> to vector<128xf32>
    %114 = vector.shape_cast %113 : vector<128xf32> to vector<1x128xf32>
    %c8_i32_47 = arith.constant 8 : i32
    %115 = tpu.dynamic_rotate %114 by %c8_i32_47 dim 1 : vector<1x128xf32>, i32 -> vector<1x128xf32>
    %116 = arith.addf %114, %115 : vector<1x128xf32>
    %c16_i32_48 = arith.constant 16 : i32
    %117 = tpu.dynamic_rotate %116 by %c16_i32_48 dim 1 : vector<1x128xf32>, i32 -> vector<1x128xf32>
    %118 = arith.addf %116, %117 : vector<1x128xf32>
    %c32_i32_49 = arith.constant 32 : i32
    %119 = tpu.dynamic_rotate %118 by %c32_i32_49 dim 1 : vector<1x128xf32>, i32 -> vector<1x128xf32>
    %120 = arith.addf %118, %119 : vector<1x128xf32>
    %c64_i32_50 = arith.constant 64 : i32
    %121 = tpu.dynamic_rotate %120 by %c64_i32_50 dim 1 : vector<1x128xf32>, i32 -> vector<1x128xf32>
    %122 = arith.addf %120, %121 : vector<1x128xf32>
    %cst_51 = arith.constant 0.001953125 : f32
    %123 = vector.broadcast %cst_51 : f32 to vector<1x128xf32>
    %124 = arith.mulf %122, %123 : vector<1x128xf32>
    %125 = vector.broadcast %124 : vector<1x128xf32> to vector<32x128xf32>
    %126 = arith.subf %110, %125 : vector<32x128xf32>
    %127 = arith.mulf %126, %126 : vector<32x128xf32>
    %cst_52 = arith.constant dense<0.000000e+00> : vector<128xf32>
    %128 = vector.multi_reduction <add>, %127, %cst_52 [0] : vector<32x128xf32> to vector<128xf32>
    %129 = vector.shape_cast %128 : vector<128xf32> to vector<1x128xf32>
    %c8_i32_53 = arith.constant 8 : i32
    %130 = tpu.dynamic_rotate %129 by %c8_i32_53 dim 1 : vector<1x128xf32>, i32 -> vector<1x128xf32>
    %131 = arith.addf %129, %130 : vector<1x128xf32>
    %c16_i32_54 = arith.constant 16 : i32
    %132 = tpu.dynamic_rotate %131 by %c16_i32_54 dim 1 : vector<1x128xf32>, i32 -> vector<1x128xf32>
    %133 = arith.addf %131, %132 : vector<1x128xf32>
    %c32_i32_55 = arith.constant 32 : i32
    %134 = tpu.dynamic_rotate %133 by %c32_i32_55 dim 1 : vector<1x128xf32>, i32 -> vector<1x128xf32>
    %135 = arith.addf %133, %134 : vector<1x128xf32>
    %c64_i32_56 = arith.constant 64 : i32
    %136 = tpu.dynamic_rotate %135 by %c64_i32_56 dim 1 : vector<1x128xf32>, i32 -> vector<1x128xf32>
    %137 = arith.addf %135, %136 : vector<1x128xf32>
    %cst_57 = arith.constant 0.001953125 : f32
    %138 = vector.broadcast %cst_57 : f32 to vector<1x128xf32>
    %139 = arith.mulf %137, %138 : vector<1x128xf32>
    %cst_58 = arith.constant 9.99999974E-6 : f32
    %140 = vector.broadcast %cst_58 : f32 to vector<1x128xf32>
    %141 = arith.addf %139, %140 : vector<1x128xf32>
    %142 = math.rsqrt %141 : vector<1x128xf32>
    %143 = vector.broadcast %142 : vector<1x128xf32> to vector<32x128xf32>
    %144 = arith.mulf %126, %143 : vector<32x128xf32>
    %145 = vector.broadcast %111 : vector<1x128xf32> to vector<32x128xf32>
    %146 = arith.mulf %144, %145 : vector<32x128xf32>
    %147 = vector.broadcast %112 : vector<1x128xf32> to vector<32x128xf32>
    %148 = arith.addf %146, %147 : vector<32x128xf32>
    %149 = arith.truncf %0 : vector<32x64xf32> to vector<32x64xbf16>
    %c0_59 = arith.constant 0 : index
    %c0_60 = arith.constant 0 : index
    %150 = vector.load %arg3[%c0_59, %c0_60] : memref<64x128xbf16, #tpu.memory_space<vmem>>, vector<64x128xbf16>
    %cst_61 = arith.constant dense<0.000000e+00> : vector<32x128xf32>
    %151 = tpu.matmul %149, %150, %cst_61 {dimension_numbers = #tpu.dot_dimension_numbers<[1], [0], [0], [1], [0, 0, 1, 1], [], []>} : vector<32x64xbf16>, vector<64x128xbf16>, vector<32x128xf32> -> vector<32x128xf32>
    %152 = arith.addf %148, %151 : vector<32x128xf32>
    %cst_62 = arith.constant 0.000000e+00 : f32
    %153 = vector.broadcast %cst_62 : f32 to vector<32x128xf32>
    %154 = arith.maximumf %152, %153 : vector<32x128xf32>
    %c0_63 = arith.constant 0 : index
    %c0_64 = arith.constant 0 : index
    %155 = vector.load %arg5[%c0_63, %c0_64] : memref<32x128xf32, #tpu.memory_space<vmem>>, vector<32x128xf32>
    tpu.vector_store %arg5[%c0_63, %c0_64], %154 {strides = array<i32>} : memref<32x128xf32, #tpu.memory_space<vmem>>, vector<32x128xf32>,
    return
  }
}

</mosaic_0001>

<bundles_post_ra>
// kernel: simple_residual_block.1
= control target key start
LH: loop header
LB: loop body
LE: loop exit
PB: predicated region body
PF: predicated region fallthrough
CT: control target
= control target key end

     0   :  { %v26_v0 = vlaneseq  ;;  %vm174_vm0 = vcmask 523264   ;;  %s1379_s24 = smov 16   ;;  %s1380_s25 = smov 32   ;;  %vm1382_vm7 = vmmov 1   ;;  %s1730_s1 = inlined_call_operand.vmem [shape: bf16[3,64,128], index: 1, kind: input, shape index: {}]   ;;  %s1731_s0 = inlined_call_operand.vmem [shape: f32[32,64], index: 0, kind: input, shape index: {}]   ;;  %s1732_s2 = inlined_call_operand.vmem [shape: bf16[3,128,128], index: 2, kind: input, shape index: {}]   ;;  %s1733_s4 = inlined_call_operand.vmem [shape: f32[4,128], index: 4, kind: input, shape index: {}]   ;;  %s1734_s3 = inlined_call_operand.vmem [shape: bf16[64,128], index: 3, kind: input, shape index: {}]   ;;  %s1735_s5 = inlined_call_operand.vmem [shape: f32[32,128], index: 5, kind: output, shape index: {}]  }
   0x1   :  { %v1334_v1 = vld [vmem:[%s1730_s1 + $0x20] sm:$0xff]   ;;  %v1335_v2 = vld [vmem:[%s1730_s1 + $0x28] sm:$0xff]   ;;  %v1336_v4 = vld [vmem:[%s1730_s1 + $0x30] sm:$0xff]   ;;  %s1381_s26 = smov 64  }
   0x2   :  { %v1419_v3 = vshrl.u32 %v26_v0, 7  ;;  %1205 = vmatprep.subr.bf16.mxu0 %v1334_v1  ;;  %v1427_v5 = vld [vmem:[%s1731_s0] sm:$0xff]  ;;  %v22_v6 = vld [vmem:[%s1731_s0 + $0x8] sm:$0xff]  ;;  %v1440_v10 = vld [vmem:[%s1731_s0 + $0x18] sm:$0xff] }
   0x3   :  { %1206 = vmatpush3.bf16.msra.mxu0 %v1334_v1  ;;  %v87_v7 = vrot.slane %v1427_v5, 7  ;;  %v1435_v9 = vpack.c.bf16 %v22_v6, %v1427_v5  ;;  %v90_v11 = vrot.slane %v1440_v10, 7  ;;  %v1337_v12 = vld [vmem:[%s1730_s1 + $0x38] sm:$0xff]   ;;  %v88_v13 = vrot.slane %v22_v6, 7  ;;  %v23_v16 = vld [vmem:[%s1731_s0 + $0x10] sm:$0xff]  ;;  %v1338_v17 = vld [vmem:[%s1730_s1] sm:$0xff]  }
   0x4   :  { %1207 = vmatprep.subr.bf16.mxu0 %v1335_v2  ;;  %v35_v8 = vand.u32 15, %v1419_v3  ;;  %vm91_vm1 = vcmp.lt.s32.totalorder %v1419_v3, 1  ;;  %v1466_v20 = vpack.c.bf16 %v1440_v10, %v23_v16  ;;  %v1339_v22 = vld [vmem:[%s1730_s1 + $0x8] sm:$0xff]   ;;  %v29_v23 = vadd.s32 16, %v1419_v3  ;;  %v1340_v26 = vld [vmem:[%s1730_s1 + $0x10] sm:$0xff]   ;;  %v1341_v32 = vld [vmem:[%s1730_s1 + $0x18] sm:$0xff]  }
   0x5   :  { %1213 = vmatprep.mubr.msk.bf16.mxu0 %vm174_vm0, %v1435_v9  ;;  %v95_v15 = vsel %vm91_vm1, %v90_v11, %v87_v7  ;;  %v94_v18 = vsel %vm91_vm1, %v87_v7, %v88_v13  ;;  %v28_v24 = vadd.s32 8, %v1419_v3  ;;  %v89_v25 = vrot.slane %v23_v16, 7  ;;  %v1342_v39 = vld [vmem:[%s1730_s1 + $0x40] sm:$0xff]   ;;  %v1343_v44 = vld [vmem:[%s1730_s1 + $0x48] sm:$0xff]   ;;  %v1344_v47 = vld [vmem:[%s1730_s1 + $0x50] sm:$0xff]  }
   0x6   :  { %vm1449_vm2 = vcmp.gt.s32.totalorder %v35_v8, 0  ;;  %v49_v27 = vand.u32 15, %v29_v23  ;;  %v109_v28 = vrot.slane %v22_v6, 1  ;;  %v110_v29 = vrot.slane %v23_v16, 1  ;;  %v1345_v49 = vld [vmem:[%s1730_s1 + $0x58] sm:$0xff]   ;;  %s1378_s1 = smov 8  }
   0x7   :  { %1208 = vmatpush3.bf16.msra.mxu0 %v1335_v2  ;;  %v104_v19 = vsel %vm1449_vm2, %v95_v15, 0.0  ;;  %v42_v30 = vand.u32 15, %v28_v24  ;;  %vm112_vm3 = vcmp.lt.s32.totalorder %v1419_v3, 7  ;;  %v108_v31 = vrot.slane %v1427_v5, 1  ;;  %vm1109_vm8 = vmpackc.low %vm1382_vm7, %vm1449_vm2  ;;  %v1358_v14 = vld [vmem:[%s1732_s2 + $0x20] sm:$0xff]   ;;  %v1364_v33 = vld [vmem:[%s1732_s2 + $0x90] sm:$0xff]  }
   0x8   :  { %1209 = vmatprep.subr.bf16.mxu0 %v1336_v4  ;;  %v129_v21 = vpack.c.bf16 %v94_v18, %v104_v19  ;;  %vm1484_vm4 = vcmp.gt.s32.totalorder %v49_v27, 0  ;;  %v93_v34 = vsel %vm91_vm1, %v88_v13, %v89_v25  ;;  %v114_v36 = vsel %vm112_vm3, %v109_v28, %v110_v29  ;;  %v1365_v35 = vld [vmem:[%s1732_s2 + $0x98] sm:$0xff]  }
   0x9   :  { %vm1490_vm5 = vcmp.lt.s32.totalorder %v42_v30, 15  ;;  %v92_v37 = vsel %vm91_vm1, %v89_v25, %v90_v11  ;;  %v106_v38 = vsel %vm1484_vm4, %v93_v34, 0.0  ;;  %v115_v40 = vsel %vm112_vm3, %v108_v31, %v109_v28  ;;  %vm1112_vm9 = vmpackc.low %vm1382_vm7, %vm1484_vm4 }
   0xa   :  { %v126_v41 = vsel %vm1490_vm5, %v114_v36, 0.0  ;;  %v130_v42 = vpack.c.bf16 %v92_v37, %v106_v38  ;;  %v30_v45 = vadd.s32 24, %v1419_v3  ;;  %v111_v46 = vrot.slane %v1440_v10, 1  ;;  %vm1139_vm10 = vmpackc.low %vm1490_vm5, %vm1382_vm7 }
   0xb   :  { %1210 = vmatpush3.bf16.msra.mxu0 %v1336_v4  ;;  %v309_v43 = vpack.c.bf16 %v126_v41, %v115_v40 }
   0xc   :  { %1211 = vmatprep.subr.bf16.mxu0 %v1337_v12  ;;  %v56_v48 = vand.u32 15, %v30_v45  ;;  %v116_v51 = vsel %vm112_vm3, %v111_v46, %v108_v31  ;;  %v113_v52 = vsel %vm112_vm3, %v110_v29, %v111_v46 }
   0xe   :  { %vm1520_vm6 = vcmp.lt.s32.totalorder %v56_v48, 15  ;;  %v1351_v48 = vld [vmem:[%s1732_s2 + $0x68] sm:$0xff]  }
   0xf   :  { %1212 = vmatpush3.bf16.msra.mxu0 %v1337_v12  ;;  %v128_v53 = vsel %vm1520_vm6, %v116_v51, 0.0  ;;  %v1538_v12 = vsub.s32 0, %v1419_v3  ;;  %v1353_v51 = vld [vmem:[%s1732_s2 + $0x78] sm:$0xff]   ;;  %vm1142_vm11 = vmpackc.low %vm1520_vm6, %vm1382_vm7 }
  0x10   :  { %1217 = vmatprep.subr.bf16.mxu0 %v1338_v17  ;;  %v310_v54 = vpack.c.bf16 %v128_v53, %v113_v52  ;;  %v1354_v52 = vld [vmem:[%s1732_s2] sm:$0xff]  }
  0x12   :  { %1214 = vmatmul.mubr.msk.bf16.vlgmr.msra.gmra.mrb[0].mxu0 %vm174_vm0, %v1466_v20 }
  0x13   :  { %1218 = vmatpush3.bf16.msra.mxu0 %v1338_v17  ;;  %1225 = vmatprep.mubr.msk.bf16.mxu0 %vm174_vm0, %v129_v21 }
  0x14   :  { %1219 = vmatprep.subr.bf16.mxu0 %v1339_v22 }
  0x17   :  { %1220 = vmatpush3.bf16.msra.mxu0 %v1339_v22 }
  0x18   :  { %1221 = vmatprep.subr.bf16.mxu0 %v1340_v26 }
  0x1b   :  { %1222 = vmatpush3.bf16.msra.mxu0 %v1340_v26 }
  0x1c   :  { %1223 = vmatprep.subr.bf16.mxu0 %v1341_v32 }
  0x1f   :  { %1224 = vmatpush3.bf16.msra.mxu0 %v1341_v32 }
  0x20   :  { %1229 = vmatprep.subr.bf16.mxu0 %v1342_v39 }
  0x22   :  { %1226 = vmatmul.mubr.msk.bf16.vlgmr.msra.gmra.mrb[0].mxu0 %vm174_vm0, %v130_v42  ;;  %v1347_v42 = vld [vmem:[%s1732_s2 + $0x48] sm:$0xff]  }
  0x23   :  { %1230 = vmatpush3.bf16.msra.mxu0 %v1342_v39  ;;  %1237 = vmatprep.mubr.msk.bf16.mxu0 %vm174_vm0, %v309_v43  ;;  %v1346_v39 = vld [vmem:[%s1732_s2 + $0x40] sm:$0xff]   ;;  %v1348_v43 = vld [vmem:[%s1732_s2 + $0x50] sm:$0xff]  }
  0x24   :  { %1231 = vmatprep.subr.bf16.mxu0 %v1343_v44  ;;  %1241 = vmatprep.subr.bf16.mxu1 %v1346_v39 }
  0x25   :  { %1242 = vmatpush3.bf16.msra.mxu1 %v1346_v39  ;;  %v1362_v39 = vld [vmem:[%s1732_s2 + $0x80] sm:$0xff]  }
  0x26   :  { %1243 = vmatprep.subr.bf16.mxu1 %v1347_v42 }
  0x27   :  { %1232 = vmatpush3.bf16.msra.mxu0 %v1343_v44  ;;  %v1349_v44 = vld [vmem:[%s1732_s2 + $0x58] sm:$0xff]  }
  0x28   :  { %1233 = vmatprep.subr.bf16.mxu0 %v1344_v47 }
  0x29   :  { %1244 = vmatpush3.bf16.msra.mxu1 %v1347_v42 }
  0x2a   :  { %1245 = vmatprep.subr.bf16.mxu1 %v1348_v43 }
  0x2b   :  { %1234 = vmatpush3.bf16.msra.mxu0 %v1344_v47  ;;  %v1350_v47 = vld [vmem:[%s1732_s2 + $0x60] sm:$0xff]  }
  0x2c   :  { %1235 = vmatprep.subr.bf16.mxu0 %v1345_v49 }
  0x2d   :  { %1246 = vmatpush3.bf16.msra.mxu1 %v1348_v43 }
  0x2e   :  { %1247 = vmatprep.subr.bf16.mxu1 %v1349_v44 }
  0x2f   :  { %1236 = vmatpush3.bf16.msra.mxu0 %v1345_v49  ;;  %v1352_v49 = vld [vmem:[%s1732_s2 + $0x70] sm:$0xff]  }
  0x31   :  { %1248 = vmatpush3.bf16.msra.mxu1 %v1349_v44 }
  0x32   :  { %1238 = vmatmul.mubr.msk.bf16.vlgmr.msra.gmra.mrb[0].mxu0 %vm174_vm0, %v310_v54  ;;  %1249 = vmatprep.subr.bf16.mxu1 %v1350_v47 }
  0x33   :  { %1309 = vmatprep.mubr.msk.bf16.mxu0 %vm174_vm0, %v1435_v9 }
  0x35   :  { %1250 = vmatpush3.bf16.msra.mxu1 %v1350_v47  ;;  %v1366_v47 = vld [vmem:[%s1732_s2 + $0xa0] sm:$0xff]  }
  0x36   :  { %1251 = vmatprep.subr.bf16.mxu1 %v1351_v48 }
  0x39   :  { %1252 = vmatpush3.bf16.msra.mxu1 %v1351_v48  ;;  %v1367_v48 = vld [vmem:[%s1732_s2 + $0xa8] sm:$0xff]  }
  0x3a   :  { %1253 = vmatprep.subr.bf16.mxu1 %v1352_v49 }
  0x3d   :  { %1254 = vmatpush3.bf16.msra.mxu1 %v1352_v49  ;;  %v1368_v49 = vld [vmem:[%s1732_s2 + $0xb0] sm:$0xff]  }
  0x3e   :  { %1255 = vmatprep.subr.bf16.mxu1 %v1353_v51 }
  0x41   :  { %1256 = vmatpush3.bf16.msra.mxu1 %v1353_v51  ;;  %v1369_v51 = vld [vmem:[%s1732_s2 + $0xb8] sm:$0xff]  }
  0x42   :  { %1261 = vmatprep.subr.bf16.mxu1 %v1354_v52 }
 0x105   :  { %v1239_v55 = vpop.f32.mrb[0].mxu0 }
 0x106   :  { %v384_v56 = vpop.f32.mrb[1].mxu0 }
 0x107   :  { %v1240_v57 = vpop.f32.mrb[2].mxu0 }
 0x108   :  { %v387_v58 = vpop.f32.mrb[3].mxu0 }
 0x109   :  { %v403_v59 = vadd.f32 %v387_v58, %v384_v56 }
 0x10b   :  { %v404_v60 = vadd.f32 %v1239_v55, %v403_v59 }
 0x10d   :  { %v405_v61 = vadd.f32 %v1240_v57, %v404_v60 }
 0x10f   :  { %v406_v62 = vrot.slane %v405_v61, 4 }
 0x111   :  { %v407_v63 = vadd.f32 %v406_v62, %v405_v61 }
 0x113   :  { %v408_v0 = vrot.slane %v407_v63, 2 }
 0x115   :  { %v409_v1 = vadd.f32 %v408_v0, %v407_v63 }
 0x117   :  { %v410_v2 = vrot.slane %v409_v1, 1 }
 0x119   :  { %v411_v4 = vadd.f32 %v410_v2, %v409_v1 }
 0x11b   :  { %412 = vrot.lane.b32.xlu0 %v411_v4, %s1378_s1 }
 0x18d   :  { %v413_v5 = vpop.permute.xlu0 %412 }
 0x18e   :  { %v414_v6 = vadd.f32 %v413_v5, %v411_v4 }
 0x190   :  { %415 = vrot.lane.b32.xlu0 %v414_v6, %s1379_s24 }
 0x202   :  { %v416_v7 = vpop.permute.xlu0 %415 }
 0x203   :  { %v417_v8 = vadd.f32 %v416_v7, %v414_v6 }
 0x205   :  { %418 = vrot.lane.b32.xlu1 %v417_v8, %s1380_s25 }
 0x277   :  { %v419_v9 = vpop.permute.xlu1 %418 }
 0x278   :  { %v420_v10 = vadd.f32 %v419_v9, %v417_v8 }
 0x27a   :  { %421 = vrot.lane.b32.xlu1 %v420_v10, %s1381_s26 }
 0x2ec   :  { %v422_v11 = vpop.permute.xlu1 %421 }
 0x2ed   :  { %v423_v13 = vadd.f32 %v422_v11, %v420_v10 }
 0x2ef   :  { %v424_v15 = vmul.f32 0.001953125, %v423_v13 }
 0x2f1   :  { %v428_v16 = vrot.slane %v424_v15, %v1538_v12 }
 0x2f3   :  { %v1541_v17 = vsub.f32 %v384_v56, %v428_v16  ;;  %v1543_v18 = vsub.f32 %v387_v58, %v428_v16  ;;  %v1545_v19 = vsub.f32 %v1239_v55, %v428_v16  ;;  %v1547_v21 = vsub.f32 %v1240_v57, %v428_v16  ;;  %v1591_v57 = vld [vmem:[%s1733_s4] sm:$0xf] }
 0x2f4   :  { %v479_v58 = vsub.s32 1, %v1419_v3  ;;  %v472_v61 = vrot.slane %v1591_v57, %v1538_v12 }
 0x2f5   :  { %v433_v22 = vmul.f32 %v1541_v17, %v1541_v17  ;;  %v434_v23 = vmul.f32 %v1543_v18, %v1543_v18  ;;  %v435_v24 = vmul.f32 %v1545_v19, %v1545_v19  ;;  %v436_v26 = vmul.f32 %v1547_v21, %v1547_v21 }
 0x2f6   :  { %v480_v62 = vrot.slane %v1591_v57, %v479_v58 }
 0x2f7   :  { %v437_v25 = vadd.f32 %v434_v23, %v433_v22 }
 0x2f9   :  { %v438_v27 = vadd.f32 %v437_v25, %v435_v24  ;;  %v1355_v25 = vld [vmem:[%s1732_s2 + $0x8] sm:$0xff]  }
 0x2fb   :  { %v439_v28 = vadd.f32 %v438_v27, %v436_v26 }
 0x2fd   :  { %v440_v29 = vrot.slane %v439_v28, 4 }
 0x2ff   :  { %v441_v30 = vadd.f32 %v440_v29, %v439_v28  ;;  %v1356_v28 = vld [vmem:[%s1732_s2 + $0x10] sm:$0xff]   ;;  %v1357_v29 = vld [vmem:[%s1732_s2 + $0x18] sm:$0xff]  }
 0x301   :  { %v442_v31 = vrot.slane %v441_v30, 2 }
 0x303   :  { %v443_v32 = vadd.f32 %v442_v31, %v441_v30  ;;  %v1359_v30 = vld [vmem:[%s1732_s2 + $0x28] sm:$0xff]   ;;  %v1360_v31 = vld [vmem:[%s1732_s2 + $0x30] sm:$0xff]  }
 0x305   :  { %v444_v34 = vrot.slane %v443_v32, 1 }
 0x307   :  { %v445_v36 = vadd.f32 %v444_v34, %v443_v32  ;;  %v1361_v32 = vld [vmem:[%s1732_s2 + $0x38] sm:$0xff]  }
 0x309   :  { %446 = vrot.lane.b32.xlu0 %v445_v36, %s1378_s1 }
 0x37b   :  { %v447_v37 = vpop.permute.xlu0 %446 }
 0x37c   :  { %v448_v38 = vadd.f32 %v447_v37, %v445_v36 }
 0x37e   :  { %449 = vrot.lane.b32.xlu1 %v448_v38, %s1379_s24 }
 0x3f0   :  { %v450_v40 = vpop.permute.xlu1 %449 }
 0x3f1   :  { %v451_v41 = vadd.f32 %v450_v40, %v448_v38 }
 0x3f3   :  { %452 = vrot.lane.b32.xlu0 %v451_v41, %s1380_s25 }
 0x465   :  { %v453_v45 = vpop.permute.xlu0 %452 }
 0x466   :  { %v454_v46 = vadd.f32 %v453_v45, %v451_v41  ;;  %v1363_v45 = vld [vmem:[%s1732_s2 + $0x88] sm:$0xff]  }
 0x468   :  { %455 = vrot.lane.b32.xlu1 %v454_v46, %s1381_s26 }
 0x4da   :  { %v456_v53 = vpop.permute.xlu1 %455 }
 0x4db   :  { %v457_v54 = vadd.f32 %v456_v53, %v454_v46 }
 0x4dd   :  { %v458_v55 = vmul.f32 0.001953125, %v457_v54 }
 0x4df   :  { %v459_v56 = vadd.f32 1e-05, %v458_v55 }
 0x4e1   :  { %1374 = vrsqrt.f32 %v459_v56 }
 0x4eb   :  { %v1375_v59 = vpop.eup %1374 }
 0x4ec   :  { %v464_v60 = vrot.slane %v1375_v59, %v1538_v12 }
 0x4ee   :  { %v465_v63 = vmul.f32 %v464_v60, %v1541_v17  ;;  %v466_v0 = vmul.f32 %v464_v60, %v1543_v18  ;;  %v467_v1 = vmul.f32 %v464_v60, %v1545_v19  ;;  %v468_v2 = vmul.f32 %v464_v60, %v1547_v21 }
 0x4f0   :  { %v473_v4 = vmul.f32 %v472_v61, %v465_v63  ;;  %v474_v5 = vmul.f32 %v472_v61, %v466_v0  ;;  %v475_v6 = vmul.f32 %v472_v61, %v467_v1  ;;  %v476_v7 = vmul.f32 %v472_v61, %v468_v2 }
 0x4f2   :  { %v481_v8 = vadd.f32 %v480_v62, %v473_v4  ;;  %v482_v9 = vadd.f32 %v480_v62, %v474_v5  ;;  %v483_v10 = vadd.f32 %v480_v62, %v475_v6  ;;  %v484_v11 = vadd.f32 %v480_v62, %v476_v7 }
 0x4f4   :  { %v1602_v13 = vmax.f32 %v481_v8, 0.0  ;;  %v486_v15 = vmax.f32 %v482_v9, 0.0  ;;  %v1604_v16 = vmax.f32 %v483_v10, 0.0  ;;  %v1606_v17 = vmax.f32 %v484_v11, 0.0 }
 0x4f6   :  { %v489_v18 = vrot.slane %v1602_v13, 7  ;;  %v490_v19 = vrot.slane %v486_v15, 7  ;;  %v531_v21 = vpack.c.bf16 %v486_v15, %v1602_v13  ;;  %v532_v22 = vpack.c.bf16 %v1606_v17, %v1604_v16 }
 0x4f7   :  { %v492_v23 = vrot.slane %v1606_v17, 7  ;;  %v491_v34 = vrot.slane %v1604_v16, 7  ;;  %v501_v36 = vrot.slane %v1602_v13, 1  ;;  %v502_v37 = vrot.slane %v486_v15, 1 }
 0x4f8   :  { %v495_v24 = vsel %vm91_vm1, %v489_v18, %v490_v19  ;;  %1257 = vmatprep.mubr.bf16.mxu1 %v531_v21  ;;  %v503_v38 = vrot.slane %v1604_v16, 1 }
 0x4f9   :  { %1258 = vmatmul.mubr.bf16.vlgmr.msra.gmra.mrb[0].mxu1 %v532_v22  ;;  %v496_v26 = vsel %vm91_vm1, %v492_v23, %v489_v18  ;;  %v493_v40 = vsel %vm91_vm1, %v491_v34, %v492_v23  ;;  %v494_v41 = vsel %vm91_vm1, %v490_v19, %v491_v34  ;;  %v507_v43 = vsel %vm112_vm3, %v501_v36, %v502_v37 }
 0x4fa   :  { %1262 = vmatpush3.bf16.msra.mxu1 %v1354_v52  ;;  %v1110_v27 = vpack.c.bf16 %v495_v24, %v496_v26  ;;  %v506_v42 = vsel %vm112_vm3, %v502_v37, %v503_v38  ;;  %v1113_v44 = vpack.c.bf16 %v493_v40, %v494_v41  ;;  %v504_v52 = vrot.slane %v1606_v17, 1  ;;  %v1370_v37 = vld [vmem:[%s1734_s3] sm:$0xff]  }
 0x4fb   :  { %1263 = vmatprep.subr.bf16.mxu1 %v1355_v25  ;;  %v1140_v46 = vpack.c.bf16 %v506_v42, %v507_v43  ;;  %1301 = vmatprep.subr.bf16.mxu0 %v1370_v37  ;;  %v1373_v42 = vld [vmem:[%s1734_s3 + $0x18] sm:$0xff]  }
 0x4fc   :  { %1277 = vmatprep.mubr.msk.bf16.mxu1 %vm1109_vm8, %v1110_v27  ;;  %v505_v53 = vsel %vm112_vm3, %v503_v38, %v504_v52  ;;  %v508_v54 = vsel %vm112_vm3, %v504_v52, %v501_v36  ;;  %v1371_v38 = vld [vmem:[%s1734_s3 + $0x8] sm:$0xff]   ;;  %1302 = vmatpush3.bf16.msra.mxu0 %v1370_v37 }
 0x4fd   :  { %v1143_v55 = vpack.c.bf16 %v508_v54, %v505_v53  ;;  %1303 = vmatprep.subr.bf16.mxu0 %v1371_v38  ;;  %v932_v54 = vsub.s32 2, %v1419_v3 }
 0x4fe   :  { %1264 = vmatpush3.bf16.msra.mxu1 %v1355_v25 }
 0x4ff   :  { %1265 = vmatprep.subr.bf16.mxu1 %v1356_v28 }
 0x500   :  { %1304 = vmatpush3.bf16.msra.mxu0 %v1371_v38 }
 0x502   :  { %1266 = vmatpush3.bf16.msra.mxu1 %v1356_v28 }
 0x503   :  { %1267 = vmatprep.subr.bf16.mxu1 %v1357_v29 }
 0x506   :  { %1268 = vmatpush3.bf16.msra.mxu1 %v1357_v29 }
 0x507   :  { %1269 = vmatprep.subr.bf16.mxu1 %v1358_v14 }
 0x50a   :  { %1270 = vmatpush3.bf16.msra.mxu1 %v1358_v14 }
 0x50b   :  { %1271 = vmatprep.subr.bf16.mxu1 %v1359_v30 }
 0x50e   :  { %1272 = vmatpush3.bf16.msra.mxu1 %v1359_v30 }
 0x50f   :  { %1273 = vmatprep.subr.bf16.mxu1 %v1360_v31 }
 0x512   :  { %1274 = vmatpush3.bf16.msra.mxu1 %v1360_v31 }
 0x513   :  { %1275 = vmatprep.subr.bf16.mxu1 %v1361_v32 }
 0x516   :  { %1276 = vmatpush3.bf16.msra.mxu1 %v1361_v32 }
 0x517   :  { %1281 = vmatprep.subr.bf16.mxu1 %v1362_v39 }
 0x519   :  { %1278 = vmatmul.mubr.msk.bf16.vlgmr.msra.gmra.mrb[0].mxu1 %vm1112_vm9, %v1113_v44 }
 0x51a   :  { %1282 = vmatpush3.bf16.msra.mxu1 %v1362_v39  ;;  %1297 = vmatprep.mubr.msk.bf16.mxu1 %vm1139_vm10, %v1140_v46  ;;  %v1372_v39 = vld [vmem:[%s1734_s3 + $0x10] sm:$0xff]  }
 0x51b   :  { %1283 = vmatprep.subr.bf16.mxu1 %v1363_v45  ;;  %1305 = vmatprep.subr.bf16.mxu0 %v1372_v39 }
 0x51c   :  { %1306 = vmatpush3.bf16.msra.mxu0 %v1372_v39 }
 0x51d   :  { %1307 = vmatprep.subr.bf16.mxu0 %v1373_v42 }
 0x51e   :  { %1284 = vmatpush3.bf16.msra.mxu1 %v1363_v45 }
 0x51f   :  { %1285 = vmatprep.subr.bf16.mxu1 %v1364_v33 }
 0x520   :  { %1308 = vmatpush3.bf16.msra.mxu0 %v1373_v42 }
 0x522   :  { %1286 = vmatpush3.bf16.msra.mxu1 %v1364_v33 }
 0x523   :  { %1287 = vmatprep.subr.bf16.mxu1 %v1365_v35  ;;  %1310 = vmatmul.mubr.msk.bf16.vlgmr.msra.gmra.mrb[4].mxu0 %vm174_vm0, %v1466_v20  ;;  %v940_v20 = vsub.s32 3, %v1419_v3 }
 0x526   :  { %1288 = vmatpush3.bf16.msra.mxu1 %v1365_v35 }
 0x527   :  { %1289 = vmatprep.subr.bf16.mxu1 %v1366_v47 }
 0x52a   :  { %1290 = vmatpush3.bf16.msra.mxu1 %v1366_v47 }
 0x52b   :  { %1291 = vmatprep.subr.bf16.mxu1 %v1367_v48 }
 0x52e   :  { %1292 = vmatpush3.bf16.msra.mxu1 %v1367_v48 }
 0x52f   :  { %1293 = vmatprep.subr.bf16.mxu1 %v1368_v49 }
 0x532   :  { %1294 = vmatpush3.bf16.msra.mxu1 %v1368_v49 }
 0x533   :  { %1295 = vmatprep.subr.bf16.mxu1 %v1369_v51 }
 0x536   :  { %1296 = vmatpush3.bf16.msra.mxu1 %v1369_v51 }
 0x539   :  { %1298 = vmatmul.mubr.msk.bf16.vlgmr.msra.gmra.mrb[0].mxu1 %vm1142_vm11, %v1143_v55 }
 0x5f6   :  { %v1311_v33 = vpop.f32.mrb[4].mxu0 }
 0x5f7   :  { %v1012_v35 = vpop.f32.mrb[5].mxu0 }
 0x5f8   :  { %v1312_v47 = vpop.f32.mrb[6].mxu0 }
 0x5f9   :  { %v1015_v48 = vpop.f32.mrb[7].mxu0 }
 0x60c   :  { %v1299_v56 = vpop.f32.mrb[0].mxu1 }
 0x60d   :  { %v845_v58 = vpop.f32.mrb[1].mxu1 }
 0x60e   :  { %v1300_v59 = vpop.f32.mrb[2].mxu1 }
 0x60f   :  { %v848_v60 = vpop.f32.mrb[3].mxu1 }
 0x610   :  { %v864_v61 = vadd.f32 %v848_v60, %v845_v58 }
 0x612   :  { %v865_v62 = vadd.f32 %v1299_v56, %v864_v61 }
 0x614   :  { %v866_v63 = vadd.f32 %v1300_v59, %v865_v62 }
 0x616   :  { %v867_v0 = vrot.slane %v866_v63, 4 }
 0x618   :  { %v868_v1 = vadd.f32 %v867_v0, %v866_v63 }
 0x61a   :  { %v869_v2 = vrot.slane %v868_v1, 2 }
 0x61c   :  { %v870_v4 = vadd.f32 %v869_v2, %v868_v1 }
 0x61e   :  { %v871_v5 = vrot.slane %v870_v4, 1 }
 0x620   :  { %v872_v6 = vadd.f32 %v871_v5, %v870_v4 }
 0x622   :  { %873 = vrot.lane.b32.xlu0 %v872_v6, %s1378_s1 }
 0x694   :  { %v874_v7 = vpop.permute.xlu0 %873 }
 0x695   :  { %v875_v50 = vadd.f32 %v874_v7, %v872_v6 }
 0x697   :  { %876 = vrot.lane.b32.xlu1 %v875_v50, %s1379_s24 }
 0x709   :  { %v877_v8 = vpop.permute.xlu1 %876 }
 0x70a   :  { %v878_v9 = vadd.f32 %v877_v8, %v875_v50 }
 0x70c   :  { %879 = vrot.lane.b32.xlu0 %v878_v9, %s1380_s25 }
 0x77e   :  { %v880_v10 = vpop.permute.xlu0 %879 }
 0x77f   :  { %v881_v11 = vadd.f32 %v880_v10, %v878_v9 }
 0x781   :  { %882 = vrot.lane.b32.xlu1 %v881_v11, %s1381_s26 }
 0x7f3   :  { %v883_v13 = vpop.permute.xlu1 %882 }
 0x7f4   :  { %v884_v15 = vadd.f32 %v883_v13, %v881_v11 }
 0x7f6   :  { %v885_v16 = vmul.f32 0.001953125, %v884_v15 }
 0x7f8   :  { %v889_v17 = vrot.slane %v885_v16, %v1538_v12 }
 0x7fa   :  { %v890_v18 = vsub.f32 %v845_v58, %v889_v17  ;;  %v891_v19 = vsub.f32 %v848_v60, %v889_v17  ;;  %v892_v21 = vsub.f32 %v1299_v56, %v889_v17  ;;  %v893_v22 = vsub.f32 %v1300_v59, %v889_v17 }
 0x7fb   :  { %v933_v58 = vrot.slane %v1591_v57, %v932_v54  ;;  %v941_v59 = vrot.slane %v1591_v57, %v940_v20 }
 0x7fc   :  { %v894_v23 = vmul.f32 %v890_v18, %v890_v18  ;;  %v895_v24 = vmul.f32 %v891_v19, %v891_v19  ;;  %v896_v25 = vmul.f32 %v892_v21, %v892_v21  ;;  %v897_v27 = vmul.f32 %v893_v22, %v893_v22 }
 0x7fe   :  { %v898_v26 = vadd.f32 %v895_v24, %v894_v23 }
 0x800   :  { %v899_v28 = vadd.f32 %v898_v26, %v896_v25 }
 0x802   :  { %v900_v29 = vadd.f32 %v899_v28, %v897_v27 }
 0x804   :  { %v901_v14 = vrot.slane %v900_v29, 4 }
 0x806   :  { %v902_v30 = vadd.f32 %v901_v14, %v900_v29 }
 0x808   :  { %v903_v31 = vrot.slane %v902_v30, 2 }
 0x80a   :  { %v904_v32 = vadd.f32 %v903_v31, %v902_v30 }
 0x80c   :  { %v905_v34 = vrot.slane %v904_v32, 1 }
 0x80e   :  { %v906_v36 = vadd.f32 %v905_v34, %v904_v32 }
 0x810   :  { %907 = vrot.lane.b32.xlu0 %v906_v36, %s1378_s1 }
 0x882   :  { %v908_v40 = vpop.permute.xlu0 %907 }
 0x883   :  { %v909_v41 = vadd.f32 %v908_v40, %v906_v36 }
 0x885   :  { %910 = vrot.lane.b32.xlu1 %v909_v41, %s1379_s24 }
 0x8f7   :  { %v911_v43 = vpop.permute.xlu1 %910 }
 0x8f8   :  { %v912_v44 = vadd.f32 %v911_v43, %v909_v41 }
 0x8fa   :  { %913 = vrot.lane.b32.xlu0 %v912_v44, %s1380_s25 }
 0x96c   :  { %v914_v45 = vpop.permute.xlu0 %913 }
 0x96d   :  { %v915_v46 = vadd.f32 %v914_v45, %v912_v44 }
 0x96f   :  { %916 = vrot.lane.b32.xlu1 %v915_v46, %s1381_s26 }
 0x9e1   :  { %v917_v49 = vpop.permute.xlu1 %916 }
 0x9e2   :  { %v918_v51 = vadd.f32 %v917_v49, %v915_v46 }
 0x9e4   :  { %v919_v52 = vmul.f32 0.001953125, %v918_v51 }
 0x9e6   :  { %v920_v53 = vadd.f32 1e-05, %v919_v52 }
 0x9e8   :  { %1376 = vrsqrt.f32 %v920_v53 }
 0x9f2   :  { %v1377_v55 = vpop.eup %1376 }
 0x9f3   :  { %v925_v56 = vrot.slane %v1377_v55, %v1538_v12 }
 0x9f5   :  { %v928_v60 = vmul.f32 %v925_v56, %v892_v21  ;;  %v926_v61 = vmul.f32 %v925_v56, %v890_v18  ;;  %v929_v62 = vmul.f32 %v925_v56, %v893_v22  ;;  %v927_v63 = vmul.f32 %v925_v56, %v891_v19 }
 0x9f7   :  { %v936_v0 = vmul.f32 %v933_v58, %v928_v60  ;;  %v934_v1 = vmul.f32 %v933_v58, %v926_v61  ;;  %v937_v2 = vmul.f32 %v933_v58, %v929_v62  ;;  %v935_v4 = vmul.f32 %v933_v58, %v927_v63 }
 0x9f9   :  { %v944_v5 = vadd.f32 %v941_v59, %v936_v0  ;;  %v942_v6 = vadd.f32 %v941_v59, %v934_v1  ;;  %v945_v7 = vadd.f32 %v941_v59, %v937_v2  ;;  %v943_v50 = vadd.f32 %v941_v59, %v935_v4 }
 0x9fb   :  { %v1029_v3 = vadd.f32 %v1311_v33, %v944_v5  ;;  %v1027_v8 = vadd.f32 %v1012_v35, %v942_v6  ;;  %v1030_v9 = vadd.f32 %v1312_v47, %v945_v7  ;;  %v1028_v12 = vadd.f32 %v1015_v48, %v943_v50 }
 0x9fd   :  { %v1033_v10 = vmax.f32 %v1029_v3, 0.0  ;;  %v1031_v11 = vmax.f32 %v1027_v8, 0.0  ;;  %v1034_v13 = vmax.f32 %v1030_v9, 0.0  ;;  %v1032_v57 = vmax.f32 %v1028_v12, 0.0 }
 0x9ff   :  { %1037 = vst [vmem:[%s1735_s5 + $0x10] sm:$0xff] %v1033_v10  ;;  %1035 = vst [vmem:[%s1735_s5] sm:$0xff] %v1031_v11 }
 0xa00   :  { %1038 = vst [vmem:[%s1735_s5 + $0x18] sm:$0xff] %v1034_v13  ;;  %1036 = vst [vmem:[%s1735_s5 + $0x8] sm:$0xff] %v1032_v57 }

</bundles_post_ra>
